<compile_context>
chip_gen: v7x
topology: tpu7x:2x2x1
jax: 0.10.0
libtpu: 0.0.40
codegen_flags: <defaults>
</compile_context>

<pallas_src>
import math
import functools

import jax
import jax.numpy as jnp
from jax.experimental import pallas as pl
from jax.experimental.pallas import tpu as pltpu


def _round_up(x, m):
    return ((x + m - 1) // m) * m


def _cdiv(a, b):
    return -(-a // b)


def _pick_tile(dim, granule, cap, prefer_exact=False):
    """Pick a tile size (multiple of `granule`, <= cap) for an axis of length `dim`.

    Prefers tiles that exactly divide round_up(dim, granule) (=> zero extra
    padding, and for the K/N axes no padded copy of the weight), falling back
    to a balanced tile when the best divisor is too small.  `prefer_exact`
    biases harder toward divisor tiles (used for K/N, where padding forces a
    full weight copy).
    """
    cap = max(cap, granule)
    d = _round_up(dim, granule)
    if d <= cap:
        return d
    units = d // granule
    cap_units = cap // granule
    # Largest divisor of `units` that fits under the cap -> no extra padding.
    best_div = 1
    for u in range(1, cap_units + 1):
        if units % u == 0:
            best_div = u
    # Balanced (possibly non-dividing) tile -> minimal padding for the
    # smallest block count (avoids e.g. M=300 -> tile 256 -> Mp=512).
    n_blocks = _cdiv(units, cap_units)
    balanced = _cdiv(units, n_blocks)
    bias_factor = 4 if prefer_exact else 2
    if bias_factor * best_div >= balanced:
        return best_div * granule
    return balanced * granule


def _linear_kernel_f32(x_ref, w_ref, b_ref, o_ref):
    """f32 output: accumulate directly into the resident output tile.

    o_ref's index_map ignores the k grid axis, so the (tm, tn) tile stays
    resident in VMEM across the whole K reduction.  Bias is folded into the
    k==0 init, making every k step a plain dot+add (no epilogue copy).
    """
    @pl.when(pl.program_id(2) == 0)
    def _():
        o_ref[...] = jnp.broadcast_to(b_ref[...], o_ref.shape)

    o_ref[...] += jnp.dot(
        x_ref[...], w_ref[...], preferred_element_type=jnp.float32
    )


def _linear_kernel_acc(x_ref, w_ref, b_ref, o_ref, acc_ref):
    """Narrow-output path: f32 scratch accumulator, cast+store on last k."""
    k = pl.program_id(2)

    @pl.when(k == 0)
    def _():
        acc_ref[...] = jnp.broadcast_to(
            b_ref[...].astype(jnp.float32), acc_ref.shape
        )

    acc_ref[...] += jnp.dot(
        x_ref[...], w_ref[...], preferred_element_type=jnp.float32
    )

    @pl.when(k == pl.num_programs(2) - 1)
    def _():
        o_ref[...] = acc_ref[...].astype(o_ref.dtype)


@functools.partial(
    jax.jit, static_argnames=("tm", "tn", "tk", "operand_dtype")
)
def my_linear(x, weight, bias, *, tm=512, tn=512, tk=1024, operand_dtype=None):
    """y = x @ weight + bias, matching torch.matmul(x, W) + b.

    Supports arbitrary leading batch dims on x (flattened into M).
    `operand_dtype=jnp.bfloat16` casts x and W for the bf16-native MXU on
    v6e/v7x (f32 accumulation + f32 output kept); default None is exact f32.
    """
    orig_shape = x.shape
    K = orig_shape[-1]
    x2 = x.reshape(-1, K)
    M = x2.shape[0]
    K2, N = weight.shape
    assert K == K2, f"inner dims mismatch: x has K={K}, weight has K={K2}"
    out_dtype = x.dtype

    # Tile selection: sublane=8 granularity on M, lane=128 on K/N.  Prefer
    # tiles that divide round_up(K,128)/round_up(N,128) so the weight needs
    # no padded HBM copy when K,N are lane-aligned.
    tm = _pick_tile(M, 8, tm)
    tk = _pick_tile(K, 128, tk, prefer_exact=True)
    tn = _pick_tile(N, 128, tn, prefer_exact=True)

    Mp, Kp, Np = _round_up(M, tm), _round_up(K, tk), _round_up(N, tn)

    # v7x has 2 TensorCores that share the ("parallel","parallel") grid axes:
    # make sure there are at least 2 output blocks when there is room.
    if Mp // tm == 1 and Np // tn == 1 and Np >= 256:
        tn = _pick_tile(N, 128, max(128, (Np // 2) // 128 * 128),
                        prefer_exact=True)
        Np = _round_up(N, tn)

    grid = (Mp // tm, Np // tn, Kp // tk)

    # Optional bf16 operand cast (f32 accumulate) before padding.
    op_dtype = jnp.dtype(operand_dtype) if operand_dtype is not None \
        else jnp.dtype(x.dtype)
    xc = x2 if x2.dtype == op_dtype else x2.astype(op_dtype)
    wc = weight if weight.dtype == op_dtype else weight.astype(op_dtype)

    # Zero-padding is exact for the matmul; padded rows/cols are sliced away.
    # With divisor tiles the weight pad is skipped whenever K,N are aligned.
    xp = xc if (Mp == M and Kp == K) else jnp.pad(
        xc, ((0, Mp - M), (0, Kp - K)))
    wp = wc if (Kp == K and Np == N) else jnp.pad(
        wc, ((0, Kp - K), (0, Np - N)))
    bp = bias.astype(jnp.float32)
    if Np != N:
        bp = jnp.pad(bp, (0, Np - N))
    bp = bp.reshape(1, Np)

    direct_f32 = out_dtype == jnp.float32
    if direct_f32:
        kernel = _linear_kernel_f32
        scratch_shapes = []
    else:
        kernel = _linear_kernel_acc
        scratch_shapes = [pltpu.VMEM((tm, tn), jnp.float32)]

    # VMEM budget from the actual tile footprint (double-buffered pipeline),
    # capped at 48 MiB so it stays safe on v7x's 64 MiB VMEM.
    op_bytes = op_dtype.itemsize
    out_bytes = jnp.dtype(out_dtype).itemsize
    vmem_bytes = 2 * (tm * tk * op_bytes + tk * tn * op_bytes
                      + tn * 4 + tm * tn * out_bytes)
    if not direct_f32:
        vmem_bytes += tm * tn * 4
    vmem_limit = max(16 << 20, min(48 << 20, vmem_bytes + (8 << 20)))

    # Cost estimate with real per-operand itemsizes and HBM reuse factors
    # (x is re-read once per N tile, W once per M tile; output tile stays
    # resident in VMEM across K so it hits HBM once).
    grid_m, grid_n = grid[0], grid[1]
    cost = pl.CostEstimate(
        flops=2 * Mp * Np * Kp,
        transcendentals=0,
        bytes_accessed=(op_bytes * Mp * Kp * grid_n
                        + op_bytes * Kp * Np * grid_m
                        + 4 * Np * grid_m
                        + out_bytes * Mp * Np),
    )

    out_p = pl.pallas_call(
        kernel,
        out_shape=jax.ShapeDtypeStruct((Mp, Np), out_dtype),
        grid_spec=pltpu.PrefetchScalarGridSpec(
            num_scalar_prefetch=0,
            grid=grid,
            in_specs=[
                pl.BlockSpec((tm, tk), lambda i, j, k: (i, k)),   # x tile
                pl.BlockSpec((tk, tn), lambda i, j, k: (k, j)),   # W tile
                pl.BlockSpec((1, tn), lambda i, j, k: (0, j)),    # bias tile
            ],
            out_specs=pl.BlockSpec((tm, tn), lambda i, j, k: (i, j)),
            scratch_shapes=scratch_shapes,
        ),
        compiler_params=pltpu.CompilerParams(
            dimension_semantics=("parallel", "parallel", "arbitrary"),
            vmem_limit_bytes=int(vmem_limit),
        ),
        cost_estimate=cost,
    )(xp, wp, bp)

    out = out_p[:M, :N]
    return out.reshape(orig_shape[:-1] + (N,))


def init_my_linear_params(key, inputdim, outputdim, dtype=jnp.float32):
    """Matches MyLinear.reset_parameters: uniform(-stdv, stdv), stdv=1/sqrt(outputdim)."""
    stdv = 1.0 / math.sqrt(outputdim)
    kw, kb = jax.random.split(key)
    weight = jax.random.uniform(
        kw, (inputdim, outputdim), dtype=dtype, minval=-stdv, maxval=stdv
    )
    bias = jax.random.uniform(
        kb, (outputdim,), dtype=dtype, minval=-stdv, maxval=stdv
    )
    return weight, bias


if __name__ == "__main__":
    key = jax.random.PRNGKey(0)
    k_x, k_p, k_x2, k_p2 = jax.random.split(key, 4)

    # Test 1: lane-aligned shapes (divisor tiles -> no weight padding copy).
    batch, inputdim, outputdim = 16, 128, 256
    x = jax.random.normal(k_x, (batch, inputdim), dtype=jnp.float32)
    weight, bias = init_my_linear_params(k_p, inputdim, outputdim)
    out = jax.block_until_ready(my_linear(x, weight, bias))
    ref = x @ weight + bias
    assert out.shape == (batch, outputdim)
    assert jnp.allclose(out, ref, atol=1e-4, rtol=1e-4)

    # Test 2: non-divisible shapes + leading batch dims (minimal-padding path).
    b2, s2, inputdim2, outputdim2 = 3, 5, 100, 200
    x2 = jax.random.normal(k_x2, (b2, s2, inputdim2), dtype=jnp.float32)
    weight2, bias2 = init_my_linear_params(k_p2, inputdim2, outputdim2)
    out2 = jax.block_until_ready(my_linear(x2, weight2, bias2))
    ref2 = jnp.einsum("bsk,kn->bsn", x2, weight2) + bias2
    assert out2.shape == (b2, s2, outputdim2)
    assert jnp.allclose(out2, ref2, atol=1e-4, rtol=1e-4)

    # Test 3: optional bf16 operand path (f32 accumulate/output).
    out3 = jax.block_until_ready(
        my_linear(x, weight, bias, operand_dtype=jnp.bfloat16))
    assert out3.shape == (batch, outputdim)
    assert jnp.allclose(out3, ref, atol=5e-2, rtol=5e-2)

    print("KERNEL_OK")
</pallas_src>

<mosaic_0001>
module attributes {stable_mosaic.version = 11 : i64} {
  func.func @_linear_kernel_f32(%arg0: i32, %arg1: i32, %arg2: i32, %arg3: memref<16x128xf32, #tpu.memory_space<vmem>>, %arg4: memref<128x128xf32, #tpu.memory_space<vmem>>, %arg5: memref<1x128xf32, #tpu.memory_space<vmem>>, %arg6: memref<16x128xf32, #tpu.memory_space<vmem>>) attributes {dimension_semantics = [#tpu.dimension_semantics<parallel>, #tpu.dimension_semantics<parallel>, #tpu.dimension_semantics<arbitrary>], iteration_bounds = array<i64: 1, 2, 1>, scalar_prefetch = 0 : i64, scratch_operands = 0 : i64, tpu.core_type = #tpu.core_type<tc>, window_params = [{transform_indices = @transform_0, window_bounds = array<i64: 16, 128>}, {transform_indices = @transform_1, window_bounds = array<i64: 128, 128>}, {transform_indices = @transform_2, window_bounds = array<i64: 1, 128>}, {transform_indices = @transform_3, window_bounds = array<i64: 16, 128>}]} {
    %c0_i32 = arith.constant 0 : i32
    %0 = arith.cmpi eq, %arg2, %c0_i32 : i32
    %1 = arith.extui %0 : i1 to i32
    %c0_i32_0 = arith.constant 0 : i32
    %2 = arith.cmpi ne, %1, %c0_i32_0 : i32
    scf.if %2 {
      %c0_8 = arith.constant 0 : index
      %c0_9 = arith.constant 0 : index
      %9 = vector.load %arg5[%c0_8, %c0_9] : memref<1x128xf32, #tpu.memory_space<vmem>>, vector<1x128xf32>
      %10 = vector.shape_cast %9 : vector<1x128xf32> to vector<1x128xf32>
      %11 = vector.broadcast %10 : vector<1x128xf32> to vector<16x128xf32>
      %c0_10 = arith.constant 0 : index
      %c0_11 = arith.constant 0 : index
      %12 = vector.load %arg6[%c0_10, %c0_11] : memref<16x128xf32, #tpu.memory_space<vmem>>, vector<16x128xf32>
      tpu.vector_store %arg6[%c0_10, %c0_11], %11 {strides = array<i32>} : memref<16x128xf32, #tpu.memory_space<vmem>>, vector<16x128xf32>,
    } else {
    }
    %c0 = arith.constant 0 : index
    %c0_1 = arith.constant 0 : index
    %3 = vector.load %arg6[%c0, %c0_1] : memref<16x128xf32, #tpu.memory_space<vmem>>, vector<16x128xf32>
    %c0_2 = arith.constant 0 : index
    %c0_3 = arith.constant 0 : index
    %4 = vector.load %arg3[%c0_2, %c0_3] : memref<16x128xf32, #tpu.memory_space<vmem>>, vector<16x128xf32>
    %c0_4 = arith.constant 0 : index
    %c0_5 = arith.constant 0 : index
    %5 = vector.load %arg4[%c0_4, %c0_5] : memref<128x128xf32, #tpu.memory_space<vmem>>, vector<128x128xf32>
    %cst = arith.constant dense<0.000000e+00> : vector<16x128xf32>
    %6 = tpu.matmul %4, %5, %cst {dimension_numbers = #tpu.dot_dimension_numbers<[1], [0], [0], [1], [0, 0, 1, 1], [], []>} : vector<16x128xf32>, vector<128x128xf32>, vector<16x128xf32> -> vector<16x128xf32>
    %7 = arith.addf %3, %6 : vector<16x128xf32>
    %c0_6 = arith.constant 0 : index
    %c0_7 = arith.constant 0 : index
    %8 = vector.load %arg6[%c0_6, %c0_7] : memref<16x128xf32, #tpu.memory_space<vmem>>, vector<16x128xf32>
    tpu.vector_store %arg6[%c0_6, %c0_7], %7 {strides = array<i32>} : memref<16x128xf32, #tpu.memory_space<vmem>>, vector<16x128xf32>,
    return
  }
  func.func @transform_0(%arg0: i32, %arg1: i32, %arg2: i32) -> (i32, i32) {
    %c0_i32 = arith.constant 0 : i32
    return %arg0, %arg2 : i32, i32
  }
  func.func @transform_1(%arg0: i32, %arg1: i32, %arg2: i32) -> (i32, i32) {
    %c0_i32 = arith.constant 0 : i32
    return %arg2, %arg1 : i32, i32
  }
  func.func @transform_2(%arg0: i32, %arg1: i32, %arg2: i32) -> (i32, i32) {
    %c0_i32 = arith.constant 0 : i32
    %c0_i32_0 = arith.constant 0 : i32
    return %c0_i32, %arg1 : i32, i32
  }
  func.func @transform_3(%arg0: i32, %arg1: i32, %arg2: i32) -> (i32, i32) {
    %c0_i32 = arith.constant 0 : i32
    return %arg0, %arg1 : i32, i32
  }
}

</mosaic_0001>

<bundles_post_ra>
// kernel: my_linear.1
= control target key start
LH: loop header
LB: loop body
LE: loop exit
PB: predicated region body
PF: predicated region fallthrough
CT: control target
= control target key end

     0   :  { %8 = vsyncpa [#allocation3], 0  ;;  %s1102_s0 = inlined_call_operand.hbm [shape: f32[16,128], index: 0, kind: input, shape index: {}]   ;;  %s1103_s1 = inlined_call_operand.hbm [shape: f32[128,256], index: 1, kind: input, shape index: {}]   ;;  %s1104_s2 = inlined_call_operand.vmem [shape: f32[1,256], index: 2, kind: input, shape index: {}]   ;;  %s1105_s3 = inlined_call_operand.hbm [shape: f32[16,256], index: 3, kind: output, shape index: {}]  }
   0x1   :  { %9 = vsyncpa [#allocation6], 0 }
   0x2   :  { %11 = vsyncpa [#allocation6 + $0x1], 0 }
   0x3   :  { %12 = vsyncpa [#allocation4], 0 }
   0x4   :  { %14 = vsyncpa [#allocation4 + $0x1], 0  ;;  %s853_s12 = smov 0   ;;  %s855_s13 = smov 0  }
   0x5   :  { %s857_s14 = smov 0   ;;  %s859_s15 = smov 0  }
   0x6   :  { %s861_s16 = smov 0   ;;  %s863_s17 = smov 0  }
   0x7 LB: > { %s498_s18 = sadd.s32 4294967295, %s822_s17   ;;  %s499_s19 = sadd.s32 4294967294, %s822_s17   ;;  %s822_s17 = sphi %s863_s17, %s20_s17   ;;  %s818_s16 = sphi %s861_s16, %s1133_s16   ;;  %s814_s15 = sphi %s859_s15, %s1132_s15   ;;  %s810_s14 = sphi %s857_s14, %s1131_s14   ;;  %s806_s13 = sphi %s855_s13, %s1130_s13   ;;  %s802_s12 = sphi %s853_s12, %s1129_s12  }
   0x8   : > { %p83_p0 = scmp.ne.s32.totalorder %s810_s14, %s806_s13  ;;  %p84_p1 = scmp.eq.s32.totalorder %s822_s17, 0 }
   0x9   : > { %p89_p2 = scmp.ne.s32.totalorder %s806_s13, %s802_s12  ;;  %p890_p3 = scmp.eq.s32.totalorder %s498_s18, 0 }
   0xa   : > { %p894_p4 = por %p84_p1, %p83_p0  ;;  %p141_p5 = scmp.eq.s32.totalorder %s498_s18, 1 }
   0xb   : > { %s1113_s20 = scalar_select %p890_p3, 1, 0 }
   0xc   : > { %p900_p6 = por %p890_p3, %p89_p2  ;;  %p147_p7 = scmp.eq.s32.totalorder %s499_s19, 1 }
   0xd   : > { %p904_p8 = por %p141_p5, %p83_p0  ;;  %p500_p9 = scmp.ge.s32.totalorder %s822_s17, 1 }
   0xe   : > { %s1115_s22 = scalar_select %p900_p6, 1, 0 }
   0xf   : > { %s1116_s23 = scalar_select %p904_p8, 1, 0 }
  0x10   : > { %p909_p10 = por %p147_p7, %p89_p2  ;;  %p154_p11 = scmp.lt.s32.totalorder %s822_s17, 3 }
  0x11   : > { %s824_s26 = smov [#allocation2]   ;;  %p620_p1 = scmp.lt.s32.totalorder %s822_s17, 2 }
  0x12   : > { %s1117_s24 = scalar_select %p909_p10, 1, 0 }
  0x13   : > { %p914_p12 = pnand %p500_p9, %p154_p11  ;;  %s170_s27 = sshll.u32 %s824_s26, 4  ;;  %s918_s27 = int_to_ptr.vmem [resolvable:$true] %s170_s27 }
  0x14   : > { %p932_p2 = pnand %p620_p1, %p894_p4  ;;  %s35_s30 = sadd.s32 1, %s818_s16 }
  0x15   : > { %s1118_s25 = scalar_select %p914_p12, 1, 0 }
  0x16   : > { %p607_p13 = pneg %p914_p12  ;;  %s678_s6 = scalar_lea.hbm %s1102_s0, 256 }
  0x17   : > { %s1120_s29 = scalar_select %p932_p2, 1, 0 }
  0x18   : > { %p926_p5 = pnand %p607_p13, %p890_p3  ;;  %p679_p7 = scmp.ne.s32.totalorder %s1102_s0, %s678_s6 }
  0x19   : > { %p685_p4 = scmp.lt.u32.totalorder %s678_s6, %s1102_s0 }
  0x1a   : > { %p680_p9 = pneg %p926_p5 }
  0x1c   : > { %p681_p11 = pnand %p680_p9, %p679_p7 }
  0x1e   : > { %p682_p13 = pneg %p681_p11 }
  0x20   : > { %p687_p1 = pnand %p685_p4, %p682_p13 }
  0x22   : > { %690 = shalt.err (!%p687_p1)
}
  0x23   : > { %s691_s11 = scalar_lea.vmem %s918_s27, 256  ;;  %p699_p6 = scmp.lt.s32.totalorder %s918_s27, %s918_s27 }
  0x24   : > { %p692_p0 = scmp.ne.s32.totalorder %s918_s27, %s691_s11  ;;  %p700_p3 = scmp.lt.s32.totalorder %s691_s11, %s691_s11 }
  0x26   : > { %p694_p10 = pnand %p692_p0, %p680_p9  ;;  %p701_p12 = por %p700_p3, %p699_p6 }
  0x28   : > { %p695_p8 = pneg %p694_p10 }
  0x2a   : > { %p702_p2 = pnand %p701_p12, %p695_p8 }
  0x2c   : > { %705 = shalt.err (!%p702_p2)
}
  0x2d   : > { %s1112_s18 = smov 128   ;;  %s826_s19 = smov 8  }
  0x2e   : > { %610 = dma.hbm_to_vmem [thread:$0]  (!%p926_p5), %s1102_s0, 256, %s918_s27, [#allocation3], %s1112_s18, %s1112_s18, %s826_s19  }
  0x2f   : > { %p37_p3 = scmp.ge.s32.totalorder %s35_s30, 2  ;;  %s76_s4 = sadd.s32 1, %s810_s14 }
  0x30   : > { %s184_s5 = sand.u32 1, %s810_s14   ;;  %s504_s8 = sshll.u32 %s818_s16, 7 }
  0x31   : > { %s1135_s30 = smov (%p37_p3, %s35_s30), 0  ;;  %s503_s6 = sshll.u32 %s184_s5, 7 }
  0x32   : > { %s72_s7 = ssub.s32 %s818_s16, %s1135_s30  ;;  %s971_s10 = scalar_lea.hbm %s1103_s1, %s504_s8 }
  0x33   : > { %p74_p6 = scmp.eq.s32.totalorder %s72_s7, 0  ;;  %s188_s27 = scalar_lea.vmem [#allocation5], %s503_s6 }
  0x34   : > { %s197_s11 = sshll.u32 %s188_s27, 4  ;;  %s978_s26 = scalar_lea.sflag [#allocation6], %s184_s5  ;;  %s976_s11 = int_to_ptr.vmem [resolvable:$true] %s197_s11 }
  0x35   : > { %s974_s21 = scalar_select %p74_p6, %s810_s14, %s76_s4  }
  0x36   : > { %s706_s18 = scalar_lea.hbm %s971_s10, 2048  ;;  %p1121_p10 = scmp.ne.s32.totalorder %s1120_s29, 0 }
  0x37   : > { %p707_p8 = scmp.ne.s32.totalorder %s971_s10, %s706_s18  ;;  %s711_s28 = scalar_lea.hbm %s1103_s1, 4096 }
  0x38   : > { %p708_p12 = pneg %p1121_p10  ;;  %p712_p2 = scmp.lt.u32.totalorder %s971_s10, %s1103_s1 }
  0x39   : > { %p713_p7 = scmp.lt.u32.totalorder %s711_s28, %s706_s18  ;;  %p715_p11 = scmp.lt.u32.totalorder %s706_s18, %s971_s10 }
  0x3a   : > { %p709_p0 = pnand %p708_p12, %p707_p8 }
  0x3b   : > { %p714_p9 = por %p713_p7, %p712_p2 }
  0x3c   : > { %p710_p5 = pneg %p709_p0 }
  0x3d   : > { %p716_p13 = por %p715_p11, %p714_p9 }
  0x3f   : > { %p717_p4 = pnand %p716_p13, %p710_p5 }
  0x41   : > { %720 = shalt.err (!%p717_p4)
}
  0x42   : > { %s721_s4 = scalar_lea.vmem %s976_s11, 2048  ;;  %s827_s5 = smov [#allocation5]  }
  0x43   : > { %p722_p1 = scmp.ne.s32.totalorder %s976_s11, %s721_s4  ;;  %s726_s27 = sshll.u32 %s827_s5, 4  ;;  %s727_s27 = int_to_ptr.vmem [resolvable:$false] %s726_s27 }
  0x44   : > { %s728_s7 = scalar_lea.vmem %s727_s27, 4096  ;;  %p729_p8 = scmp.lt.s32.totalorder %s976_s11, %s727_s27 }
  0x45   : > { %p724_p3 = pnand %p722_p1, %p708_p12  ;;  %p730_p0 = scmp.lt.s32.totalorder %s728_s7, %s721_s4 }
  0x47   : > { %p725_p6 = pneg %p724_p3  ;;  %p731_p2 = por %p730_p0, %p729_p8 }
  0x49   : > { %p732_p7 = pnand %p731_p2, %p725_p6 }
  0x4b   : > { %735 = shalt.err (!%p732_p7)
}
  0x4c   : > { %s828_s18 = smov 256   ;;  %s1122_s8 = smov 128  }
  0x4d   : > { %614 = dma.hbm_to_vmem [thread:$0]  (!%p1121_p10), %s971_s10, 2048, %s976_s11, %s978_s26, %s828_s18, %s1122_s8, %s826_s19  }
  0x4e   : > { %p1123_p12 = scmp.ne.s32.totalorder %s1118_s25, 0 }
  0x4f   : > { %p1124_p5 = scmp.ne.s32.totalorder (!%p1123_p12), %s1113_s20, 0 }
  0x50   : > { %215 = sbr.rel (%p1123_p12) target bundleno = 358 (0x166), region = 32 }
  0x57   : > { %789 = dma.done.wait (%p1124_p5), [#allocation3], 256  }
  0x58   : > { %791 = vsyncadd (%p1124_p5), [#allocation3], 4294967040  ;;  %s1015_s28 = sand.u32 1, %s806_s13   ;;  %p1125_p10 = scmp.ne.s32.totalorder %s1115_s22, 0 }
  0x59   : > { %s507_s29 = sshll.u32 %s1015_s28, 7  ;;  %s222_s6 = scalar_lea.sflag [#allocation6], %s1015_s28 }
  0x5a   : > { %s1019_s9 = scalar_lea.vmem [#allocation5], %s507_s29 }
  0x5b   : > { %793 = dma.done.wait (%p1125_p10), %s222_s6, 2048  }
  0x5c   : > { %795 = vsyncadd (%p1125_p10), %s222_s6, 4294965248  ;;  %v274_v0 = vld [vmem:[%s1019_s9] sm:$0xff]  ;;  %v275_v1 = vld [vmem:[%s1019_s9 + $0x8] sm:$0xff]  ;;  %p253_p9 = scmp.lt.s32.totalorder %s814_s15, 1  ;;  %s508_s22 = sshll.u32 %s1015_s28, 4 }
  0x5d   : > { %v276_v2 = vld [vmem:[%s1019_s9 + $0x10] sm:$0xff]  ;;  %v567_v3 = vpack.c.bf16 %v275_v1, %v274_v0  ;;  %v277_v4 = vld [vmem:[%s1019_s9 + $0x18] sm:$0xff]  ;;  %v278_v6 = vld [vmem:[%s1019_s9 + $0x20] sm:$0xff]  ;;  %s511_s11 = sshll.u32 %s814_s15, 7  ;;  %s250_s26 = scalar_lea.vmem [#allocation7], %s508_s22 }
  0x5e   : > { %v571_v5 = vpack.c.bf16 %v277_v4, %v276_v2  ;;  %v279_v7 = vld [vmem:[%s1019_s9 + $0x28] sm:$0xff]  ;;  %v272_v9 = vld [vmem:[#allocation2] sm:$0xff]  ;;  %v281_v11 = vld [vmem:[%s1019_s9 + $0x38] sm:$0xff]  ;;  %s254_s20 = scalar_select %p253_p9, %s814_s15, 1 }
  0x5f   : > { %568 = vmatprep.subr.bf16.mxu0 %v567_v3  ;;  %v575_v8 = vpack.c.bf16 %v279_v7, %v278_v6  ;;  %v280_v10 = vld [vmem:[%s1019_s9 + $0x30] sm:$0xff]  ;;  %564 = vmatprep.mubr.f32.mxu0 %v272_v9  ;;  %v282_v13 = vld [vmem:[%s1019_s9 + $0x40] sm:$0xff]  ;;  %v283_v14 = vld [vmem:[%s1019_s9 + $0x48] sm:$0xff]  ;;  %s385_s4 = sshll.u32 %s250_s26, 4  ;;  %s1051_s7 = scalar_lea.hbm %s1105_s3, %s511_s11  ;;  %s1053_s4 = int_to_ptr.vmem [resolvable:$true] %s385_s4 }
  0x60   : > { %570 = vmatpush3.bf16.msra.mxu0 %v567_v3  ;;  %v579_v12 = vpack.c.bf16 %v281_v11, %v280_v10  ;;  %v583_v15 = vpack.c.bf16 %v283_v14, %v282_v13  ;;  %v284_v16 = vld [vmem:[%s1019_s9 + $0x50] sm:$0xff]  ;;  %v285_v17 = vld [vmem:[%s1019_s9 + $0x58] sm:$0xff]  ;;  %v286_v19 = vld [vmem:[%s1019_s9 + $0x60] sm:$0xff]  ;;  %s255_s10 = scalar_lea.vmem %s1104_s2, %s254_s20  ;;  %s370_s15 = scalar_lea.sflag [#allocation4], %s1015_s28 }
  0x61   : > { %572 = vmatprep.subr.bf16.mxu0 %v571_v5  ;;  %v587_v18 = vpack.c.bf16 %v285_v17, %v284_v16  ;;  %v287_v20 = vld [vmem:[%s1019_s9 + $0x68] sm:$0xff]  ;;  %v288_v22 = vld [vmem:[%s1019_s9 + $0x70] sm:$0xff]  ;;  %v289_v23 = vld [vmem:[%s1019_s9 + $0x78] sm:$0xff]  ;;  %s736_s18 = scalar_lea.vmem %s1053_s4, 256  ;;  %p1126_p13 = scmp.ne.s32.totalorder %s1116_s23, 0 }
  0x62   : > { %v591_v21 = vpack.c.bf16 %v287_v20, %v286_v19  ;;  %v595_v24 = vpack.c.bf16 %v289_v23, %v288_v22  ;;  %v273_v25 = vld [vmem:[#allocation2 + $0x8] sm:$0xff]  ;;  %v509_v26 = vld [vmem:[%s255_s10] ss:$0 sm:$0xff]  ;;  %p737_p11 = scmp.ne.s32.totalorder %s1053_s4, %s736_s18  ;;  %s829_s8 = smov [#allocation7]  }
  0x63   : > { %s740_s29 = sshll.u32 %s829_s8, 4  ;;  %s741_s29 = int_to_ptr.vmem [resolvable:$false] %s740_s29 }
  0x64   : > { %574 = vmatpush3.bf16.msra.mxu0 %v571_v5  ;;  %p738_p4 = pnand %p737_p11, %p1126_p13  ;;  %s742_s6 = scalar_lea.vmem %s741_s29, 512 }
  0x65   : > { %576 = vmatprep.subr.bf16.mxu0 %v575_v8  ;;  %p743_p3 = scmp.lt.s32.totalorder %s1053_s4, %s741_s29  ;;  %p744_p6 = scmp.lt.s32.totalorder %s742_s6, %s736_s18 }
  0x66   : > { %p739_p1 = pneg %p738_p4 }
  0x67   : > { %p745_p8 = por %p744_p6, %p743_p3 }
  0x68   : > { %578 = vmatpush3.bf16.msra.mxu0 %v575_v8 }
  0x69   : > { %580 = vmatprep.subr.bf16.mxu0 %v579_v12  ;;  %p746_p0 = pnand %p745_p8, %p739_p1 }
  0x6c   : > { %582 = vmatpush3.bf16.msra.mxu0 %v579_v12 }
  0x6d   : > { %584 = vmatprep.subr.bf16.mxu0 %v583_v15 }
  0x70   : > { %586 = vmatpush3.bf16.msra.mxu0 %v583_v15 }
  0x71   : > { %588 = vmatprep.subr.bf16.mxu0 %v587_v18 }
  0x74   : > { %590 = vmatpush3.bf16.msra.mxu0 %v587_v18 }
  0x75   : > { %592 = vmatprep.subr.bf16.mxu0 %v591_v21 }
  0x78   : > { %594 = vmatpush3.bf16.msra.mxu0 %v591_v21 }
  0x79   : > { %596 = vmatprep.subr.bf16.mxu0 %v595_v24 }
  0x7c   : > { %598 = vmatpush3.bf16.msra.mxu0 %v595_v24 }
  0x7f   : > { %565 = vmatmul.mubr.f32.vlgmr.msra.gmra.mrb[0].mxu0 %v273_v25 }
 0x152   : > { %v566_v27 = vpop.f32.mrb[0].mxu0 }
 0x153   : > { %v366_v28 = vadd.f32 %v566_v27, %v509_v26  ;;  %v356_v29 = vpop.f32.mrb[1].mxu0 }
 0x154   : > { %v365_v30 = vadd.f32 %v509_v26, %v356_v29 }
 0x155   : > { %368 = vst [vmem:[%s250_s26 + $0x8] sm:$0xff] %v366_v28 }
 0x156   : > { %367 = vst [vmem:[%s250_s26] sm:$0xff] %v365_v30 }
 0x157   : > { %749 = shalt.err (!%p746_p0)
}
 0x158   : > { %s750_s9 = scalar_lea.hbm %s1051_s7, 256  ;;  %s754_s25 = scalar_lea.hbm %s1105_s3, 512 }
 0x159   : > { %p751_p2 = scmp.ne.s32.totalorder %s1051_s7, %s750_s9  ;;  %p755_p5 = scmp.lt.u32.totalorder %s1051_s7, %s1105_s3 }
 0x15a   : > { %p756_p10 = scmp.lt.u32.totalorder %s754_s25, %s750_s9  ;;  %p758_p11 = scmp.lt.u32.totalorder %s750_s9, %s1051_s7 }
 0x15b   : > { %p752_p7 = pnand %p751_p2, %p1126_p13 }
 0x15c   : > { %p757_p9 = por %p756_p10, %p755_p5 }
 0x15d   : > { %p753_p12 = pneg %p752_p7 }
 0x15e   : > { %p759_p4 = por %p758_p11, %p757_p9 }
 0x160   : > { %p760_p1 = pnand %p759_p4, %p753_p12 }
 0x162   : > { %763 = shalt.err (!%p760_p1)
}
 0x163   : > { %s830_s11 = smov 128   ;;  %s831_s26 = smov 256  }
 0x164   : > { %s832_s5 = smov 8  }
 0x165   : > { %605 = dma.vmem_to_hbm [thread:$0]  (%p1126_p13), %s1053_s4, 256, %s1051_s7, %s370_s15, %s830_s11, %s831_s26, %s832_s5  }
 0x166 PF: > { %s400_s27 = sand.u32 1, %s802_s12   ;;  %p1127_p3 = scmp.ne.s32.totalorder %s1117_s24, 0 }
 0x167   : > { %p1128_p6 = scmp.ge.s32.totalorder %s822_s17, 2  ;;  %s401_s18 = scalar_lea.sflag [#allocation4], %s400_s27 }
 0x169   : > { %p616_p8 = pnand %p1128_p6, %p1127_p3 }
 0x16b   : > { %797 = dma.done.wait (!%p616_p8), %s401_s18, 256  }
 0x16c   : > { %799 = vsyncadd (!%p616_p8), %s401_s18, 4294967040  ;;  %s20_s17 = sadd.s32 1, %s822_s17   ;;  %s1129_s12 = smov %s806_s13 }
 0x16d   : > { %p17_p0 = scmp.ge.s32.totalorder %s20_s17, 4   ;;  %s1130_s13 = smov %s810_s14 }
 0x16e   : > { %s1131_s14 = smov %s974_s21  ;;  %s1132_s15 = smov %s818_s16 }
 0x16f   : > { %s1133_s16 = smov %s1135_s30  ;;  %19 = sbr.rel (!%p17_p0) target bundleno = 7 (0x7), region = 90 }
 0x176   :  { %406 = vsyncpa [#allocation3], 1 }
 0x177   :  { %408 = vsyncpa [#allocation3 + $0x1], 1 }
 0x178   :  { %409 = vsyncpa [#allocation6], 1 }
 0x179   :  { %411 = vsyncpa [#allocation6 + $0x1], 1 }
 0x17a   :  { %412 = vsyncpa [#allocation4], 1 }
 0x17b   :  { %414 = vsyncpa [#allocation4 + $0x1], 1 }

</bundles_post_ra>
